<compile_context>
chip_gen: v7x
topology: tpu7x:2x2x1
jax: 0.10.0
libtpu: 0.0.40
codegen_flags: <defaults>
</compile_context>

<pallas_src>
import jax
import jax.numpy as jnp
from jax.experimental import pallas as pl
from jax.experimental.pallas import tpu as pltpu


def _round_up(n, m):
    return ((n + m - 1) // m) * m


def dblock_kernel(x_ref, w_gate_ref, b_gate_ref, w_head_ref, b_head_ref,
                  mu_ref, logsigma_ref):
    Hp = w_gate_ref.shape[1] // 2            # padded hidden size (multiple of 128)
    O = mu_ref.shape[1]

    x_bf = x_ref[...].astype(jnp.bfloat16)   # bf16 MXU operand, cast per tile

    # Fused gate GEMM: h = x @ [W1 | W2] + [b1 | b2]  (f32 accumulation / bias)
    h = jnp.dot(x_bf, w_gate_ref[...], preferred_element_type=jnp.float32)
    h = h + b_gate_ref[...]

    # Lane-aligned split at Hp (multiple of 128): no cross-lane relayout.
    # tanh / sigmoid / mul stay in f32 (EUP/VPU; keeps v5e happy).
    t = jnp.tanh(h[:, :Hp]) * jax.nn.sigmoid(h[:, Hp:])
    t_bf = t.astype(jnp.bfloat16)

    # Fused head GEMM: y = t @ [Wmu | Wls] + [bmu | bls]  (f32 accumulation)
    y = jnp.dot(t_bf, w_head_ref[...], preferred_element_type=jnp.float32)
    y = y + b_head_ref[...]

    mu_ref[...] = y[:, :O].astype(mu_ref.dtype)
    logsigma_ref[...] = y[:, O:].astype(logsigma_ref.dtype)


def dblock_forward(x, params, *, max_tb=1024):
    """x: [B, input_size]; params: dict of transposed f32 weights / biases.

    Returns (mu, logsigma), each [B, output_size] in float32.
    """
    B, K = x.shape
    H = params["w1"].shape[1]
    O = params["wmu"].shape[1]

    # ---- pack weights once (offline in a real model) -----------------------
    # Pad each gate half to Hp = round_up(H, 128); padded gate columns have
    # zero weight AND zero bias => tanh(0)*sigmoid(0) = 0, and the matching
    # head rows are zero-padded, so the padding contributes nothing.
    Hp = _round_up(H, 128)
    pad_h = Hp - H
    w_gate = jnp.concatenate(
        [jnp.pad(params["w1"], ((0, 0), (0, pad_h))),
         jnp.pad(params["w2"], ((0, 0), (0, pad_h)))], axis=1
    ).astype(jnp.bfloat16)                                           # [K, 2*Hp]
    b_gate = jnp.concatenate(
        [jnp.pad(params["b1"], ((0, 0), (0, pad_h))),
         jnp.pad(params["b2"], ((0, 0), (0, pad_h)))], axis=1)       # [1, 2*Hp] f32
    w_head = jnp.concatenate(
        [jnp.pad(params["wmu"], ((0, pad_h), (0, 0))),
         jnp.pad(params["wls"], ((0, pad_h), (0, 0)))], axis=1
    ).astype(jnp.bfloat16)                                           # [Hp, 2*O]
    b_head = jnp.concatenate([params["bmu"], params["bls"]], axis=1)  # [1, 2*O] f32

    # ---- batch tiling -------------------------------------------------------
    if B < 16:
        TB, Bp = B, B                 # single full-array block (always legal)
    else:
        # At least 2 grid steps so both v7x TensorCores get work; tiles up to
        # max_tb rows to amortize per-step overhead and keep DMAs large.
        TB = min(max_tb, _round_up(pl.cdiv(B, 2), 8))
        Bp = _round_up(B, TB)
    x_p = x if Bp == B else jnp.pad(x, ((0, Bp - B), (0, 0)))
    grid = (Bp // TB,)

    # ---- explicit VMEM budget (double-buffered tiles + weights + headroom) --
    tile_bytes = (
        2 * TB * K * 4                              # x tile (f32), 2 buffers
        + 2 * 2 * TB * O * 4                        # two f32 output tiles, 2 bufs
        + 2 * (K * 2 * Hp + Hp * 2 * O) * 2         # bf16 weights, 2 bufs
        + 2 * (2 * Hp + 2 * O) * 4                  # f32 biases, 2 bufs
        + 3 * TB * 2 * Hp * 4                       # h / t intermediates
    )
    vmem_limit = int(min(max(2 * tile_bytes + (4 << 20), 32 << 20), 64 << 20))

    cost = pl.CostEstimate(
        flops=2 * Bp * (K * 2 * Hp + Hp * 2 * O),
        transcendentals=2 * Bp * Hp,
        bytes_accessed=(Bp * K * 4                        # x
                        + (K * 2 * Hp + Hp * 2 * O) * 2   # bf16 weights
                        + (2 * Hp + 2 * O) * 4            # biases
                        + 2 * Bp * O * 4),                # mu + logsigma
    )

    mu_p, ls_p = pl.pallas_call(
        dblock_kernel,
        out_shape=(jax.ShapeDtypeStruct((Bp, O), jnp.float32),
                   jax.ShapeDtypeStruct((Bp, O), jnp.float32)),
        grid=grid,
        in_specs=[
            pl.BlockSpec((TB, K), lambda i: (i, 0)),        # batch-tiled input
            pl.BlockSpec((K, 2 * Hp), lambda i: (0, 0)),    # VMEM-resident weights
            pl.BlockSpec((1, 2 * Hp), lambda i: (0, 0)),
            pl.BlockSpec((Hp, 2 * O), lambda i: (0, 0)),
            pl.BlockSpec((1, 2 * O), lambda i: (0, 0)),
        ],
        out_specs=(
            pl.BlockSpec((TB, O), lambda i: (i, 0)),        # mu   (un-padded lanes)
            pl.BlockSpec((TB, O), lambda i: (i, 0)),        # logsigma
        ),
        compiler_params=pltpu.CompilerParams(
            dimension_semantics=("parallel",),              # megacore split on v7x
            vmem_limit_bytes=vmem_limit,
        ),
        cost_estimate=cost,
    )(x_p, w_gate, b_gate, w_head, b_head)

    if Bp != B:
        mu_p, ls_p = mu_p[:B], ls_p[:B]
    return mu_p, ls_p


def init_params(key, input_size, hidden_size, output_size):
    """Deterministic synthetic init (mimics nn.Linear shapes, transposed)."""
    ks = jax.random.split(key, 8)

    def lin(kw, kb, fan_in, fan_out):
        bound = 1.0 / jnp.sqrt(fan_in)
        w = jax.random.uniform(kw, (fan_in, fan_out), jnp.float32, -bound, bound)
        b = jax.random.uniform(kb, (1, fan_out), jnp.float32, -bound, bound)
        return w, b

    w1, b1 = lin(ks[0], ks[1], input_size, hidden_size)
    w2, b2 = lin(ks[2], ks[3], input_size, hidden_size)
    wmu, bmu = lin(ks[4], ks[5], hidden_size, output_size)
    wls, bls = lin(ks[6], ks[7], hidden_size, output_size)
    return {"w1": w1, "b1": b1, "w2": w2, "b2": b2,
            "wmu": wmu, "bmu": bmu, "wls": wls, "bls": bls}


def dblock_reference(x, p):
    t = jnp.tanh(x @ p["w1"] + p["b1"]) * jax.nn.sigmoid(x @ p["w2"] + p["b2"])
    return t @ p["wmu"] + p["bmu"], t @ p["wls"] + p["bls"]


if __name__ == "__main__":
    key = jax.random.PRNGKey(0)
    k_x, k_p = jax.random.split(key)

    batch, input_size, hidden_size, output_size = 8, 32, 64, 16
    x = jax.random.normal(k_x, (batch, input_size), jnp.float32)
    params = init_params(k_p, input_size, hidden_size, output_size)

    mu, logsigma = dblock_forward(x, params)
    jax.block_until_ready((mu, logsigma))

    mu_ref, ls_ref = dblock_reference(x, params)
    # bf16 MXU operands => tolerance loosened vs. the all-f32 reference.
    assert jnp.allclose(mu, mu_ref, atol=3e-2, rtol=3e-2)
    assert jnp.allclose(logsigma, ls_ref, atol=3e-2, rtol=3e-2)

    # Also exercise the multi-step (grid >= 2) and batch-padding path.
    big_B = 300
    xb = jax.random.normal(k_x, (big_B, input_size), jnp.float32)
    mu_b, ls_b = dblock_forward(xb, params)
    jax.block_until_ready((mu_b, ls_b))
    mu_bref, ls_bref = dblock_reference(xb, params)
    assert jnp.allclose(mu_b, mu_bref, atol=3e-2, rtol=3e-2)
    assert jnp.allclose(ls_b, ls_bref, atol=3e-2, rtol=3e-2)

    print("KERNEL_OK")
</pallas_src>

<mosaic_0001>
module attributes {stable_mosaic.version = 11 : i64} {
  func.func @dblock_kernel(%arg0: i32, %arg1: memref<8x32xf32, #tpu.memory_space<vmem>>, %arg2: memref<32x256xbf16, #tpu.memory_space<vmem>>, %arg3: memref<1x256xf32, #tpu.memory_space<vmem>>, %arg4: memref<128x32xbf16, #tpu.memory_space<vmem>>, %arg5: memref<1x32xf32, #tpu.memory_space<vmem>>, %arg6: memref<8x16xf32, #tpu.memory_space<vmem>>, %arg7: memref<8x16xf32, #tpu.memory_space<vmem>>) attributes {dimension_semantics = [#tpu.dimension_semantics<parallel>], iteration_bounds = array<i64: 1>, scalar_prefetch = 0 : i64, scratch_operands = 0 : i64, tpu.core_type = #tpu.core_type<tc>, window_params = [{transform_indices = @transform_0, window_bounds = array<i64: 8, 32>}, {pipeline_mode = #tpu.pipeline_mode<synchronous>, transform_indices = @transform_1, window_bounds = array<i64: 32, 256>}, {pipeline_mode = #tpu.pipeline_mode<synchronous>, transform_indices = @transform_2, window_bounds = array<i64: 1, 256>}, {pipeline_mode = #tpu.pipeline_mode<synchronous>, transform_indices = @transform_3, window_bounds = array<i64: 128, 32>}, {pipeline_mode = #tpu.pipeline_mode<synchronous>, transform_indices = @transform_4, window_bounds = array<i64: 1, 32>}, {transform_indices = @transform_5, window_bounds = array<i64: 8, 16>}, {transform_indices = @transform_6, window_bounds = array<i64: 8, 16>}]} {
    %c0 = arith.constant 0 : index
    %c0_0 = arith.constant 0 : index
    %0 = vector.load %arg1[%c0, %c0_0] : memref<8x32xf32, #tpu.memory_space<vmem>>, vector<8x32xf32>
    %1 = arith.truncf %0 : vector<8x32xf32> to vector<8x32xbf16>
    %c0_1 = arith.constant 0 : index
    %c0_2 = arith.constant 0 : index
    %2 = vector.load %arg2[%c0_1, %c0_2] : memref<32x256xbf16, #tpu.memory_space<vmem>>, vector<32x256xbf16>
    %cst = arith.constant dense<0.000000e+00> : vector<8x256xf32>
    %3 = tpu.matmul %1, %2, %cst {dimension_numbers = #tpu.dot_dimension_numbers<[1], [0], [0], [1], [0, 0, 1, 1], [], []>} : vector<8x32xbf16>, vector<32x256xbf16>, vector<8x256xf32> -> vector<8x256xf32>
    %c0_3 = arith.constant 0 : index
    %c0_4 = arith.constant 0 : index
    %4 = vector.load %arg3[%c0_3, %c0_4] : memref<1x256xf32, #tpu.memory_space<vmem>>, vector<1x256xf32>
    %5 = vector.broadcast %4 : vector<1x256xf32> to vector<8x256xf32>
    %6 = arith.addf %3, %5 : vector<8x256xf32>
    %7 = vector.extract_strided_slice %6 {offsets = [0, 0], sizes = [8, 128], strides = [1, 1]} : vector<8x256xf32> to vector<8x128xf32>
    %8 = math.tanh %7 : vector<8x128xf32>
    %9 = vector.extract_strided_slice %6 {offsets = [0, 128], sizes = [8, 128], strides = [1, 1]} : vector<8x256xf32> to vector<8x128xf32>
    %10 = arith.negf %9 : vector<8x128xf32>
    %11 = math.exp %10 : vector<8x128xf32>
    %cst_5 = arith.constant 1.000000e+00 : f32
    %12 = vector.broadcast %cst_5 : f32 to vector<8x128xf32>
    %13 = arith.addf %12, %11 : vector<8x128xf32>
    %14 = arith.divf %12, %13 : vector<8x128xf32>
    %15 = arith.mulf %8, %14 : vector<8x128xf32>
    %16 = arith.truncf %15 : vector<8x128xf32> to vector<8x128xbf16>
    %c0_6 = arith.constant 0 : index
    %c0_7 = arith.constant 0 : index
    %17 = vector.load %arg4[%c0_6, %c0_7] : memref<128x32xbf16, #tpu.memory_space<vmem>>, vector<128x32xbf16>
    %cst_8 = arith.constant dense<0.000000e+00> : vector<8x32xf32>
    %18 = tpu.matmul %16, %17, %cst_8 {dimension_numbers = #tpu.dot_dimension_numbers<[1], [0], [0], [1], [0, 0, 1, 1], [], []>} : vector<8x128xbf16>, vector<128x32xbf16>, vector<8x32xf32> -> vector<8x32xf32>
    %c0_9 = arith.constant 0 : index
    %c0_10 = arith.constant 0 : index
    %19 = vector.load %arg5[%c0_9, %c0_10] : memref<1x32xf32, #tpu.memory_space<vmem>>, vector<1x32xf32>
    %20 = vector.broadcast %19 : vector<1x32xf32> to vector<8x32xf32>
    %21 = arith.addf %18, %20 : vector<8x32xf32>
    %22 = vector.extract_strided_slice %21 {offsets = [0, 0], sizes = [8, 16], strides = [1, 1]} : vector<8x32xf32> to vector<8x16xf32>
    %c0_11 = arith.constant 0 : index
    %c0_12 = arith.constant 0 : index
    %23 = vector.load %arg6[%c0_11, %c0_12] : memref<8x16xf32, #tpu.memory_space<vmem>>, vector<8x16xf32>
    tpu.vector_store %arg6[%c0_11, %c0_12], %22 {strides = array<i32>} : memref<8x16xf32, #tpu.memory_space<vmem>>, vector<8x16xf32>,
    %24 = vector.extract_strided_slice %21 {offsets = [0, 16], sizes = [8, 16], strides = [1, 1]} : vector<8x32xf32> to vector<8x16xf32>
    %c0_13 = arith.constant 0 : index
    %c0_14 = arith.constant 0 : index
    %25 = vector.load %arg7[%c0_13, %c0_14] : memref<8x16xf32, #tpu.memory_space<vmem>>, vector<8x16xf32>
    tpu.vector_store %arg7[%c0_13, %c0_14], %24 {strides = array<i32>} : memref<8x16xf32, #tpu.memory_space<vmem>>, vector<8x16xf32>,
    return
  }
  func.func @transform_0(%arg0: i32) -> (i32, i32) {
    %c0_i32 = arith.constant 0 : i32
    %c0_i32_0 = arith.constant 0 : i32
    return %arg0, %c0_i32 : i32, i32
  }
  func.func @transform_1(%arg0: i32) -> (i32, i32) {
    %c0_i32 = arith.constant 0 : i32
    %c0_i32_0 = arith.constant 0 : i32
    %c0_i32_1 = arith.constant 0 : i32
    return %c0_i32, %c0_i32_0 : i32, i32
  }
  func.func @transform_2(%arg0: i32) -> (i32, i32) {
    %c0_i32 = arith.constant 0 : i32
    %c0_i32_0 = arith.constant 0 : i32
    %c0_i32_1 = arith.constant 0 : i32
    return %c0_i32, %c0_i32_0 : i32, i32
  }
  func.func @transform_3(%arg0: i32) -> (i32, i32) {
    %c0_i32 = arith.constant 0 : i32
    %c0_i32_0 = arith.constant 0 : i32
    %c0_i32_1 = arith.constant 0 : i32
    return %c0_i32, %c0_i32_0 : i32, i32
  }
  func.func @transform_4(%arg0: i32) -> (i32, i32) {
    %c0_i32 = arith.constant 0 : i32
    %c0_i32_0 = arith.constant 0 : i32
    %c0_i32_1 = arith.constant 0 : i32
    return %c0_i32, %c0_i32_0 : i32, i32
  }
  func.func @transform_5(%arg0: i32) -> (i32, i32) {
    %c0_i32 = arith.constant 0 : i32
    %c0_i32_0 = arith.constant 0 : i32
    return %arg0, %c0_i32 : i32, i32
  }
  func.func @transform_6(%arg0: i32) -> (i32, i32) {
    %c0_i32 = arith.constant 0 : i32
    %c0_i32_0 = arith.constant 0 : i32
    return %arg0, %c0_i32 : i32, i32
  }
}

</mosaic_0001>

<bundles_post_ra>
// kernel: tpu_custom_call.1
= control target key start
LH: loop header
LB: loop body
LE: loop exit
PB: predicated region body
PF: predicated region fallthrough
CT: control target
= control target key end

     0   :  { %12 = vsyncpa [#allocation3], 0  ;;  %v381_v2 = vmov 0   ;;  %vm63_vm0 = vcmask 261120   ;;  %s493_s0 = inlined_call_operand.vmem [shape: f32[8,32], index: 0, kind: input, shape index: {}]   ;;  %s494_s1 = inlined_call_operand.vmem [shape: bf16[32,256], index: 1, kind: input, shape index: {}]   ;;  %s495_s2 = inlined_call_operand.vmem [shape: f32[1,256], index: 2, kind: input, shape index: {}]   ;;  %s496_s3 = inlined_call_operand.vmem [shape: bf16[128,32], index: 3, kind: input, shape index: {}]   ;;  %s497_s4 = inlined_call_operand.vmem [shape: f32[1,32], index: 4, kind: input, shape index: {}]   ;;  %s498_s5 = inlined_call_operand.hbm [shape: f32[8,16], index: 5, kind: output, shape index: {0}]   ;;  %s499_s6 = inlined_call_operand.hbm [shape: f32[8,16], index: 6, kind: output, shape index: {1}]  }
   0x1   :  { %v313_v0 = vld [vmem:[%s494_s1 + $0x4] ss:$8 sps:$4 sm:$0xff]   ;;  %v315_v1 = vld [vmem:[%s494_s1] ss:$8 sps:$4 sm:$0xff]   ;;  %99 = vmatprep.mubr.bf16.mxu0 %v381_v2  ;;  %v316_v3 = vld [vmem:[%s494_s1 + $0x14] ss:$8 sps:$4 sm:$0xff]  }
   0x2   :  { %67 = vmatprep.subr.bf16.mxu0 %v313_v0  ;;  %v318_v4 = vld [vmem:[%s494_s1 + $0x10] ss:$8 sps:$4 sm:$0xff]   ;;  %v25_v5 = vld [vmem:[%s493_s0] sm:$0xff] }
   0x3   :  { %68 = vmatpush1.bf16.msra.mxu0 %v315_v1  ;;  %v26_v6 = vpack.c.bf16 %v25_v5, %v25_v5 }
   0x4   :  { %69 = vmatprep.subr.bf16.mxu0 %v316_v3 }
   0x7   :  { %70 = vmatpush1.bf16.msra.mxu0 %v318_v4 }
   0x8   :  { %13 = vsyncpa [#allocation5], 0  ;;  %v319_v7 = vld [vmem:[%s496_s3] sm:$0xff]   ;;  %v382_v8 = vmov 0.0   ;;  %v320_v9 = vld [vmem:[%s496_s3 + $0x8] sm:$0xff]   ;;  %vm383_vm1 = vmmov 0   ;;  %v33_v16 = vlaneseq }
   0x9   :  { %287 = vmatprep.subr.bf16.mxu1 %v382_v8  ;;  %v321_v10 = vld [vmem:[%s496_s3 + $0x10] sm:$0xff]   ;;  %v322_v11 = vld [vmem:[%s496_s3 + $0x18] sm:$0xff]   ;;  %v323_v12 = vld [vmem:[%s496_s3 + $0x20] sm:$0xff]   ;;  %303 = vmatprep.mubr.msk.bf16.mxu1 %vm383_vm1, %v382_v8  ;;  %s384_s23 = smov [#allocation2]   ;;  %vm228_vm2 = vcmask 130048   ;;  %s385_s25 = smov 112  }
   0xa   :  { %267 = vmatmul.mubr.msk.bf16.vlgmr.msra.gmra.mrb[0].mxu0 %vm63_vm0, %v26_v6  ;;  %288 = vmatpush3.bf16.msra.mxu1 %v319_v7  ;;  %v324_v13 = vld [vmem:[%s496_s3 + $0x28] sm:$0xff]   ;;  %v325_v14 = vld [vmem:[%s496_s3 + $0x30] sm:$0xff]   ;;  %v326_v15 = vld [vmem:[%s496_s3 + $0x38] sm:$0xff]   ;;  %v34_v17 = vshrl.u32 %v33_v16, 7  ;;  %s241_s24 = sshll.u32 %s384_s23, 4  ;;  %s242_s24 = int_to_ptr.vmem [resolvable:$true] %s241_s24 }
   0xb   :  { %289 = vmatprep.subr.bf16.mxu1 %v382_v8  ;;  %v31_v19 = vld [vmem:[%s495_s2] sm:$0x3]  ;;  %s333_s26 = scalar_lea.vmem %s242_s24, 128  ;;  %p338_p1 = scmp.lt.s32.totalorder %s242_s24, %s242_s24 }
   0xc   :  { %v39_v18 = vsub.s32 1, %v34_v17  ;;  %v35_v27 = vsub.s32 0, %v34_v17  ;;  %v269_v36 = vld [vmem:[%s497_s4] ss:$0 sm:$0xff]  ;;  %p334_p0 = scmp.ne.s32.totalorder %s242_s24, %s333_s26  ;;  %p339_p2 = scmp.lt.s32.totalorder %s333_s26, %s333_s26 }
   0xe   :  { %290 = vmatpush3.bf16.msra.mxu1 %v320_v9  ;;  %v40_v20 = vrot.slane %v31_v19, %v39_v18  ;;  %v36_v28 = vrot.slane %v31_v19, %v35_v27  ;;  %p340_p3 = por %p339_p2, %p338_p1 }
   0xf   :  { %291 = vmatprep.subr.bf16.mxu1 %v382_v8 }
  0x10   :  { %p341_p4 = pnand %p340_p3, %p334_p0 }
  0x12   :  { %292 = vmatpush3.bf16.msra.mxu1 %v321_v10 }
  0x13   :  { %293 = vmatprep.subr.bf16.mxu1 %v382_v8 }
  0x16   :  { %294 = vmatpush3.bf16.msra.mxu1 %v322_v11 }
  0x17   :  { %295 = vmatprep.subr.bf16.mxu1 %v382_v8 }
  0x1a   :  { %296 = vmatpush3.bf16.msra.mxu1 %v323_v12 }
  0x1b   :  { %297 = vmatprep.subr.bf16.mxu1 %v382_v8 }
  0x1e   :  { %298 = vmatpush3.bf16.msra.mxu1 %v324_v13 }
  0x1f   :  { %299 = vmatprep.subr.bf16.mxu1 %v382_v8 }
  0x22   :  { %300 = vmatpush3.bf16.msra.mxu1 %v325_v14 }
  0x23   :  { %301 = vmatprep.subr.bf16.mxu1 %v382_v8 }
  0x26   :  { %302 = vmatpush3.bf16.msra.mxu1 %v326_v15 }
  0xdd   :  { %v101_v21 = vpop.f32.mrb[0].mxu0 }
  0xde   :  { %v103_v22 = vpop.f32.mrb[1].mxu0  ;;  %v102_v29 = vadd.f32 %v101_v21, %v36_v28 }
  0xdf   :  { %v104_v23 = vadd.f32 %v103_v22, %v40_v20  ;;  %v105_v24 = vpop.f32.mrb[2].mxu0 }
  0xe0   :  { %v106_v25 = vpop.f32.mrb[3].mxu0 }
  0xe1   :  { %v268_v26 = vmul.f32 -1.442695, %v104_v23 }
  0xe3   :  { %327 = vpow2.f32 %v268_v26 }
  0xe4   :  { %329 = vtanh.f32 %v102_v29 }
  0xed   :  { %v328_v30 = vpop.eup %327 }
  0xee   :  { %v112_v31 = vadd.f32 1.0, %v328_v30  ;;  %v330_v32 = vpop.eup %329 }
  0xf0   :  { %331 = vrcp.f32 %v112_v31 }
  0xfa   :  { %v332_v33 = vpop.eup %331 }
  0xfb   :  { %v115_v34 = vmul.f32 %v332_v33, %v330_v32 }
  0xfd   :  { %v116_v35 = vpack.c.bf16 %v115_v34, %v115_v34 }
  0xff   :  { %304 = vmatmul.mubr.bf16.vlgmr.msra.gmra.mrb[0].mxu1 %v116_v35 }
 0x1d2   :  { %v222_v37 = vpop.f32.mrb[0].mxu1 }
 0x1d3   :  { %v223_v38 = vadd.f32 %v269_v36, %v222_v37  ;;  %v305_v39 = vpop.f32.mrb[1].mxu1 }
 0x1d4   :  { %v225_v40 = vpop.f32.mrb[2].mxu1 }
 0x1d5   :  { %v306_v41 = vpop.f32.mrb[3].mxu1  ;;  %231 = vrot.lane.b32.xlu0 %v223_v38, %s385_s25  ;;  %229 = vst.msk [vmem:[#allocation2] sm:$0xff] %vm228_vm2, %v223_v38 }
 0x1d6   :  { %344 = shalt.err (!%p341_p4)
}
 0x1d7   :  { %s345_s28 = scalar_lea.hbm %s498_s5, 128 }
 0x1d8   :  { %p346_p5 = scmp.ne.s32.totalorder %s498_s5, %s345_s28  ;;  %p349_p6 = scmp.lt.u32.totalorder %s345_s28, %s498_s5 }
 0x1da   :  { %p351_p7 = pnand %p349_p6, %p346_p5 }
 0x1dc   :  { %354 = shalt.err (!%p351_p7)
}
 0x1dd   :  { %244 = dma.vmem_to_hbm [thread:$0]  %s242_s24, 128, %s498_s5, [#allocation3]  }
 0x1de   :  { %s386_s0 = smov [#allocation4]  }
 0x1df   :  { %s251_s10 = sshll.u32 %s386_s0, 4  ;;  %s252_s10 = int_to_ptr.vmem [resolvable:$true] %s251_s10 }
 0x1e0   :  { %s355_s11 = scalar_lea.vmem %s252_s10, 128  ;;  %p360_p9 = scmp.lt.s32.totalorder %s252_s10, %s252_s10 }
 0x1e1   :  { %p356_p8 = scmp.ne.s32.totalorder %s252_s10, %s355_s11  ;;  %p361_p10 = scmp.lt.s32.totalorder %s355_s11, %s355_s11 }
 0x1e3   :  { %p362_p11 = por %p361_p10, %p360_p9 }
 0x1e5   :  { %p363_p12 = pnand %p362_p11, %p356_p8 }
 0x247   :  { %v232_v42 = vpop.permute.xlu0 %231 }
 0x248   :  { %234 = vst.msk [vmem:[#allocation4] sm:$0xff] %vm228_vm2, %v232_v42 }
 0x249   :  { %366 = shalt.err (!%p363_p12)
}
 0x24a   :  { %s367_s14 = scalar_lea.hbm %s499_s6, 128 }
 0x24b   :  { %p368_p13 = scmp.ne.s32.totalorder %s499_s6, %s367_s14  ;;  %p371_p0 = scmp.lt.u32.totalorder %s367_s14, %s499_s6 }
 0x24d   :  { %p373_p1 = pnand %p371_p0, %p368_p13 }
 0x24f   :  { %376 = shalt.err (!%p373_p1)
}
 0x250   :  { %254 = dma.vmem_to_hbm [thread:$0]  %s252_s10, 128, %s499_s6, [#allocation5]  }
 0x251   :  { %377 = dma.done.wait [#allocation3], 128  }
 0x252   :  { %378 = vsyncadd [#allocation3], 4294967168 }
 0x253   :  { %379 = dma.done.wait [#allocation5], 128  }
 0x254   :  { %380 = vsyncadd [#allocation5], 4294967168 }
 0x255   :  { %261 = vsyncpa [#allocation3], 1 }
 0x256   :  { %262 = vsyncpa [#allocation5], 1 }

</bundles_post_ra>
